<compile_context>
chip_gen: v5e
topology: v5e:2x2
jax: 0.10.0
libtpu: 0.0.40
codegen_flags: <defaults>
</compile_context>

<pallas_src>
import math
import functools

import jax
import jax.numpy as jnp
from jax.experimental import pallas as pl
from jax.experimental.pallas import tpu as pltpu


# ------------------------------ tiling helper -------------------------------

def _tile(dim, target):
    """Largest tile <= target that evenly divides dim (falls back to full dim).

    TODO(synk): replace the full-dim fallback with a cdiv grid + masked
    remainder tile so non-128-aligned shapes cannot blow the VMEM budget.
    """
    if dim <= target:
        return dim
    t = math.gcd(dim, target)
    return t if t >= 128 else dim


# ------------------------------ LayerNorm kernel -----------------------------

def _layernorm_kernel(x_ref, g_ref, b_ref, o_ref, *, eps):
    x = x_ref[...].astype(jnp.float32)
    mean = jnp.mean(x, axis=-1, keepdims=True)
    var = jnp.mean((x - mean) ** 2, axis=-1, keepdims=True)
    y = (x - mean) * jax.lax.rsqrt(var + eps)
    o_ref[...] = (y * g_ref[...] + b_ref[...]).astype(o_ref.dtype)


def layernorm(x, gamma, beta, eps=1e-5, row_tile=256, out_dtype=jnp.bfloat16):
    """Row-tiled LayerNorm; emits bf16 so downstream matmuls stream bf16."""
    # TODO(synk): fold LN statistics + normalize into the following matmul's
    # k==0 prologue to remove this extra read/write pass entirely.
    M, H = x.shape
    tm = _tile(M, row_tile)
    return pl.pallas_call(
        functools.partial(_layernorm_kernel, eps=eps),
        out_shape=jax.ShapeDtypeStruct((M, H), out_dtype),
        grid=(M // tm,),
        in_specs=[pl.BlockSpec((tm, H), lambda i: (i, 0)),
                  pl.BlockSpec((1, H), lambda i: (0, 0)),
                  pl.BlockSpec((1, H), lambda i: (0, 0))],
        out_specs=pl.BlockSpec((tm, H), lambda i: (i, 0)),
        compiler_params=pltpu.CompilerParams(
            dimension_semantics=("parallel",)),
    )(x, gamma.reshape(1, H), beta.reshape(1, H))


# ------------------------------- Linear kernels ------------------------------

def _gelu(y):
    # OpenAI tanh-approx gelu (matches gelu_impl in the reference module).
    return 0.5 * y * (1.0 + jnp.tanh(
        0.7978845608028654 * y * (1.0 + 0.044715 * y * y)))


def _linear_kernel(x_ref, w_ref, b_ref, o_ref, acc_ref, *, activation):
    k = pl.program_id(2)

    @pl.when(k == 0)
    def _():
        acc_ref[...] = jnp.zeros_like(acc_ref)

    acc_ref[...] += jnp.dot(x_ref[...], w_ref[...],
                            preferred_element_type=jnp.float32)

    @pl.when(k == pl.num_programs(2) - 1)
    def _():
        y = acc_ref[...] + b_ref[...].astype(jnp.float32)
        if activation == "gelu":
            y = _gelu(y)
        o_ref[...] = y.astype(o_ref.dtype)


def _linear_res_kernel(x_ref, w_ref, b_ref, res_ref, o_ref, acc_ref, *,
                       activation, res_alpha):
    k = pl.program_id(2)

    @pl.when(k == 0)
    def _():
        acc_ref[...] = jnp.zeros_like(acc_ref)

    acc_ref[...] += jnp.dot(x_ref[...], w_ref[...],
                            preferred_element_type=jnp.float32)

    @pl.when(k == pl.num_programs(2) - 1)
    def _():
        y = acc_ref[...] + b_ref[...].astype(jnp.float32)
        if activation == "gelu":
            y = _gelu(y)
        y = y + res_alpha * res_ref[...].astype(jnp.float32)
        o_ref[...] = y.astype(o_ref.dtype)


def linear(x, w, b, activation=None, residual=None, res_alpha=1.0,
           out_dtype=jnp.float32, tm=512, tn=256, tk=512):
    """y = x @ w + b [+ gelu] [+ res_alpha * residual], (M,N,K)-tiled matmul.

    x and w are expected in bf16 (MXU operands); accumulation is f32 in VMEM;
    bias / gelu / alpha-scaled residual are fused into the last-K epilogue.
    """
    M, K = x.shape
    K2, N = w.shape
    assert K == K2
    tm = _tile(M, tm)
    tn = _tile(N, tn)
    tk = _tile(K, tk)
    grid = (M // tm, N // tn, K // tk)

    x_spec = pl.BlockSpec((tm, tk), lambda i, j, k: (i, k))
    w_spec = pl.BlockSpec((tk, tn), lambda i, j, k: (k, j))
    b_spec = pl.BlockSpec((1, tn), lambda i, j, k: (0, j))
    o_spec = pl.BlockSpec((tm, tn), lambda i, j, k: (i, j))
    scratch = [pltpu.VMEM((tm, tn), jnp.float32)]
    cp = pltpu.CompilerParams(
        dimension_semantics=("parallel", "parallel", "arbitrary"))

    bytes_accessed = (M * K * x.dtype.itemsize + K * N * w.dtype.itemsize
                      + M * N * jnp.dtype(out_dtype).itemsize + N * 4)
    if residual is not None:
        bytes_accessed += M * N * residual.dtype.itemsize
    cost = pl.CostEstimate(
        flops=int(2 * M * N * K),
        transcendentals=int(M * N if activation == "gelu" else 0),
        bytes_accessed=int(bytes_accessed))

    if residual is None:
        return pl.pallas_call(
            functools.partial(_linear_kernel, activation=activation),
            out_shape=jax.ShapeDtypeStruct((M, N), out_dtype),
            grid=grid,
            in_specs=[x_spec, w_spec, b_spec],
            out_specs=o_spec,
            scratch_shapes=scratch,
            compiler_params=cp,
            cost_estimate=cost,
        )(x, w, b.reshape(1, N))

    r_spec = pl.BlockSpec((tm, tn), lambda i, j, k: (i, j))
    return pl.pallas_call(
        functools.partial(_linear_res_kernel, activation=activation,
                          res_alpha=res_alpha),
        out_shape=jax.ShapeDtypeStruct((M, N), out_dtype),
        grid=grid,
        in_specs=[x_spec, w_spec, b_spec, r_spec],
        out_specs=o_spec,
        scratch_shapes=scratch,
        compiler_params=cp,
        cost_estimate=cost,
    )(x, w, b.reshape(1, N), residual)


# -------------------- fused QKV split + 2D rotary + relayout ------------------

def _rotary_split_kernel(mixed_ref, cp_ref, sp_ref, cb_ref, sb_ref,
                         q_ref, k_ref, v_ref, *, batch, nheads, head_dim):
    d = head_dim
    half = d // 2
    quarter = d // 4

    mixed = mixed_ref[...]            # [ts, B, 3*H] bf16
    cos_p = cp_ref[...]               # [ts, B, d/2] f32
    sin_p = sp_ref[...]
    cos_b = cb_ref[...]
    sin_b = sb_ref[...]

    def rot_half_apply(u, c, s):
        # u: [ts, d/2]; rotate_half(u) = concat(-u2, u1)
        u1 = u[:, :quarter]
        u2 = u[:, quarter:]
        ur = jnp.concatenate([-u2, u1], axis=-1)
        return u * c + ur * s

    def rot2d(x, cp, sp, cb, sb):
        # first half rotated with position ids, second half with block ids.
        return jnp.concatenate(
            [rot_half_apply(x[:, :half], cp, sp),
             rot_half_apply(x[:, half:], cb, sb)], axis=-1)

    for b in range(batch):
        cp = cos_p[:, b, :]
        sp = sin_p[:, b, :]
        cb = cos_b[:, b, :]
        sb = sin_b[:, b, :]
        for h in range(nheads):
            base = h * 3 * d
            row = b * nheads + h
            qh = mixed[:, b, base:base + d].astype(jnp.float32)
            kh = mixed[:, b, base + d:base + 2 * d].astype(jnp.float32)
            vh = mixed[:, b, base + 2 * d:base + 3 * d]
            q_ref[row, :, :] = rot2d(qh, cp, sp, cb, sb).astype(q_ref.dtype)
            k_ref[row, :, :] = rot2d(kh, cp, sp, cb, sb).astype(k_ref.dtype)
            v_ref[row, :, :] = vh.astype(v_ref.dtype)


def rotary_split_qkv(mixed, cos_p, sin_p, cos_b, sin_b, num_heads,
                     seq_tile=128, out_dtype=jnp.bfloat16):
    """Fused split(q,k,v) + GLM 2D rotary + bf16 cast + relayout.

    mixed:   [S, B, 3*H]  (QKV projection output, head-blocked columns)
    cos/sin: [S, B, D//2] gathered per (position id / block id)
    returns q, k, v in the attention layout [B*NH, S, D], bf16.
    """
    S, B, threeH = mixed.shape
    assert threeH % 3 == 0
    H = threeH // 3
    D = H // num_heads
    assert D % 4 == 0, "head_dim must be divisible by 4 for 2D rotary"
    rot = D // 2

    ts = _tile(S, seq_tile)
    # keep the mixed block modest so double-buffering fits scoped VMEM.
    while ts > 8 and ts % 2 == 0 and ts * B * threeH * mixed.dtype.itemsize > (4 << 20):
        ts //= 2

    out_sd = jax.ShapeDtypeStruct((B * num_heads, S, D), out_dtype)
    q, k, v = pl.pallas_call(
        functools.partial(_rotary_split_kernel, batch=B, nheads=num_heads,
                          head_dim=D),
        out_shape=[out_sd, out_sd, out_sd],
        grid=(S // ts,),
        in_specs=[pl.BlockSpec((ts, B, threeH), lambda i: (i, 0, 0)),
                  pl.BlockSpec((ts, B, rot), lambda i: (i, 0, 0)),
                  pl.BlockSpec((ts, B, rot), lambda i: (i, 0, 0)),
                  pl.BlockSpec((ts, B, rot), lambda i: (i, 0, 0)),
                  pl.BlockSpec((ts, B, rot), lambda i: (i, 0, 0))],
        out_specs=[pl.BlockSpec((B * num_heads, ts, D), lambda i: (0, i, 0)),
                   pl.BlockSpec((B * num_heads, ts, D), lambda i: (0, i, 0)),
                   pl.BlockSpec((B * num_heads, ts, D), lambda i: (0, i, 0))],
        compiler_params=pltpu.CompilerParams(
            dimension_semantics=("parallel",)),
    )(mixed, cos_p, sin_p, cos_b, sin_b)
    return q, k, v


# ---------------------------- Flash attention kernel -------------------------

def _flash_attn_kernel(ctx_ref, q_ref, k_ref, v_ref, o_ref,
                       m_scr, l_scr, acc_scr, *, num_heads, tq, tk,
                       sm_scale, mask_value):
    bh = pl.program_id(0)
    qi = pl.program_id(1)
    ki = pl.program_id(2)

    @pl.when(ki == 0)
    def _():
        m_scr[...] = jnp.full_like(m_scr, -jnp.inf)
        l_scr[...] = jnp.zeros_like(l_scr)
        acc_scr[...] = jnp.zeros_like(acc_scr)

    ctx_len = ctx_ref[bh // num_heads]          # scalar (SMEM)
    q_start = qi * tq
    k_start = ki * tk

    # GLM prefix-causal mask: kv position j is masked for query i iff
    # (j > i) and (j >= context_length).  Skip kv tiles that are entirely
    # masked for this q tile.
    tile_live = jnp.logical_or(k_start <= q_start + (tq - 1),
                               k_start < ctx_len)

    @pl.when(tile_live)
    def _():
        # scores: bf16 operands on the MXU, f32 accumulation / softmax math.
        s = jax.lax.dot_general(q_ref[...], k_ref[...],
                                (((1,), (1,)), ((), ())),
                                preferred_element_type=jnp.float32)  # [tq,tk]
        s = s * sm_scale                        # folded: q.k / sqrt(D)
        rows = q_start + jax.lax.broadcasted_iota(jnp.int32, (tq, tk), 0)
        cols = k_start + jax.lax.broadcasted_iota(jnp.int32, (tq, tk), 1)
        masked = jnp.logical_and(cols > rows, cols >= ctx_len)
        s = jnp.where(masked, mask_value, s)    # masked logit = -10000*coeff

        m_prev = m_scr[...]                                     # [tq, 128]
        m_new = jnp.maximum(m_prev, jnp.max(s, axis=-1, keepdims=True))
        corr = jnp.exp(m_prev - m_new)
        p = jnp.exp(s - m_new[:, :1])
        l_scr[...] = corr * l_scr[...] + jnp.sum(p, axis=-1, keepdims=True)
        acc_scr[...] = corr[:, :1] * acc_scr[...] + jnp.dot(
            p.astype(v_ref.dtype), v_ref[...],
            preferred_element_type=jnp.float32)
        m_scr[...] = m_new

    @pl.when(ki == pl.num_programs(2) - 1)
    def _():
        inv_l = pl.reciprocal(l_scr[...], approx=True)          # [tq, 128]
        o_ref[...] = (acc_scr[...] * inv_l[:, :1]).astype(o_ref.dtype)


def attention(q, k, v, context_lengths, num_heads, sm_scale, mask_value,
              tq=256, tk=512, out_dtype=jnp.bfloat16):
    """Flash attention over [B*NH, S, D] with in-kernel GLM prefix-causal mask."""
    BH, S, D = q.shape
    tq = _tile(S, tq)
    tk = _tile(S, tk)
    grid = (BH, S // tq, S // tk)
    cost = pl.CostEstimate(
        flops=int(4 * BH * S * S * D),
        transcendentals=int(BH * S * S),
        bytes_accessed=int(4 * BH * S * D * q.dtype.itemsize))
    return pl.pallas_call(
        functools.partial(_flash_attn_kernel, num_heads=num_heads, tq=tq,
                          tk=tk, sm_scale=sm_scale, mask_value=mask_value),
        out_shape=jax.ShapeDtypeStruct((BH, S, D), out_dtype),
        grid_spec=pltpu.PrefetchScalarGridSpec(
            num_scalar_prefetch=1,
            grid=grid,
            in_specs=[
                pl.BlockSpec((None, tq, D), lambda b, i, j, ctx: (b, i, 0)),
                pl.BlockSpec((None, tk, D), lambda b, i, j, ctx: (b, j, 0)),
                pl.BlockSpec((None, tk, D), lambda b, i, j, ctx: (b, j, 0)),
            ],
            out_specs=pl.BlockSpec((None, tq, D),
                                   lambda b, i, j, ctx: (b, i, 0)),
            scratch_shapes=[pltpu.VMEM((tq, 128), jnp.float32),
                            pltpu.VMEM((tq, 128), jnp.float32),
                            pltpu.VMEM((tq, D), jnp.float32)]),
        compiler_params=pltpu.CompilerParams(
            dimension_semantics=("parallel", "parallel", "arbitrary")),
        cost_estimate=cost,
    )(context_lengths, q, k, v)


# ------------------------------ glue (plain JAX) -----------------------------

def rotary_tables(seq_len, rot_dim):
    inv_freq = 1.0 / (10000.0 ** (jnp.arange(0, rot_dim, 2, dtype=jnp.float32)
                                  / rot_dim))
    t = jnp.arange(seq_len, dtype=jnp.float32)
    freqs = t[:, None] * inv_freq[None, :]
    emb = jnp.concatenate([freqs, freqs], axis=-1)             # [S, rot_dim]
    return jnp.cos(emb), jnp.sin(emb)


def glm_block_forward(params, hidden_states, position_ids, context_lengths,
                      layer_id, num_heads, num_layers, eps=1e-5):
    """ChatGLM GLMBlock forward.

    hidden_states: [S, B, H] f32, position_ids: [B, 2, S] int.
    context_lengths: [B] int32 encoding GLM's standard attention mask
    masked(i, j) = (j > i) and (j >= context_length_b), generated in-kernel.
    """
    S, B, H = hidden_states.shape
    NH = num_heads
    D = H // NH
    alpha = (2.0 * num_layers) ** 0.5
    coeff = float(layer_id + 1)

    # --- input layernorm (bf16 out => bf16 MXU operands downstream) ---
    x2d = hidden_states.reshape(S * B, H)
    attn_input = layernorm(x2d, params["ln1_g"], params["ln1_b"], eps)

    # --- QKV projection (tiled bf16 matmul, f32 accumulation, bias fused) ---
    mixed = linear(attn_input, params["qkv_w"], params["qkv_b"],
                   out_dtype=jnp.bfloat16)                       # [S*B, 3H]
    mixed = mixed.reshape(S, B, 3 * H)

    # --- tiny cos/sin gathers for the 2D rotary (per position / block id) ---
    rot_dim = D // 2
    cos_tab, sin_tab = rotary_tables(S, rot_dim)
    pos = position_ids[:, 0, :].T.astype(jnp.int32)              # [S, B]
    blk = position_ids[:, 1, :].T.astype(jnp.int32)              # [S, B]
    cos_p, sin_p = cos_tab[pos], sin_tab[pos]                    # [S, B, rot]
    cos_b, sin_b = cos_tab[blk], sin_tab[blk]

    # --- fused split + 2D rotary + relayout to [B*NH, S, D] (Pallas) ---
    q, k, v = rotary_split_qkv(mixed, cos_p, sin_p, cos_b, sin_b, NH)

    # --- flash attention; prefix-causal mask generated in-kernel ---
    ctx_lens = context_lengths.astype(jnp.int32).reshape(B)
    ctx = attention(q, k, v, ctx_lens, NH,
                    sm_scale=1.0 / math.sqrt(D),
                    mask_value=-10000.0 * coeff)                 # [B*NH, S, D]

    # TODO(synk): fold this last relayout into the dense matmul's x BlockSpec.
    ctx2d = jnp.transpose(ctx.reshape(B, NH, S, D),
                          (2, 0, 1, 3)).reshape(S * B, H)        # bf16

    # --- output projection with fused alpha-scaled residual epilogue ---
    h = linear(ctx2d, params["dense_w"], params["dense_b"],
               residual=attn_input, res_alpha=alpha)             # f32

    # --- post-attention layernorm + GLU MLP (gelu fused) + fused residual ---
    mlp_in = layernorm(h, params["ln2_g"], params["ln2_b"], eps)  # bf16
    inter = linear(mlp_in, params["h4h_w"], params["h4h_b"],
                   activation="gelu", out_dtype=jnp.bfloat16)
    out = linear(inter, params["fhh_w"], params["fhh_b"],
                 residual=mlp_in, res_alpha=alpha)               # f32

    return out.reshape(S, B, H)


# ------------------------------ pure-JAX reference ---------------------------

def glm_block_reference(params, hidden_states, position_ids, context_lengths,
                        layer_id, num_heads, num_layers, eps=1e-5):
    S, B, H = hidden_states.shape
    NH = num_heads
    D = H // NH
    alpha = (2.0 * num_layers) ** 0.5
    coeff = float(layer_id + 1)
    p = {name: val.astype(jnp.float32) for name, val in params.items()}

    def ln(x, g, b):
        mu = jnp.mean(x, -1, keepdims=True)
        var = jnp.mean((x - mu) ** 2, -1, keepdims=True)
        return (x - mu) / jnp.sqrt(var + eps) * g + b

    ai = ln(hidden_states, p["ln1_g"], p["ln1_b"])               # [S,B,H]
    mixed = ai @ p["qkv_w"] + p["qkv_b"]
    mixed = mixed.reshape(S, B, NH, 3 * D)
    q, k, v = jnp.split(mixed, 3, axis=-1)

    rot_dim = D // 2
    cos_tab, sin_tab = rotary_tables(S, rot_dim)
    pos = position_ids[:, 0, :].T.astype(jnp.int32)
    blk = position_ids[:, 1, :].T.astype(jnp.int32)

    def rot_half(x):
        h2 = x.shape[-1] // 2
        return jnp.concatenate([-x[..., h2:], x[..., :h2]], axis=-1)

    def apply_rot(x, pid):
        c = cos_tab[pid][:, :, None, :]
        s = sin_tab[pid][:, :, None, :]
        return x * c + rot_half(x) * s

    q1, q2 = jnp.split(q, 2, -1)
    k1, k2 = jnp.split(k, 2, -1)
    q = jnp.concatenate([apply_rot(q1, pos), apply_rot(q2, blk)], -1)
    k = jnp.concatenate([apply_rot(k1, pos), apply_rot(k2, blk)], -1)

    qb = q.transpose(1, 2, 0, 3)
    kb = k.transpose(1, 2, 0, 3)
    vb = v.transpose(1, 2, 0, 3)
    scores = jnp.einsum("bhqd,bhkd->bhqk", qb, kb) / (math.sqrt(D) * coeff)
    i_idx = jnp.arange(S)[:, None]
    j_idx = jnp.arange(S)[None, :]
    mask = (j_idx > i_idx)[None] & (j_idx[None] >= context_lengths[:, None, None])
    scores = jnp.where(mask[:, None, :, :], -10000.0, scores)
    probs = jax.nn.softmax(scores * coeff, axis=-1)
    ctxr = jnp.einsum("bhqk,bhkd->bhqd", probs, vb)
    ctxr = ctxr.transpose(2, 0, 1, 3).reshape(S, B, H)

    h_ = ctxr @ p["dense_w"] + p["dense_b"] + alpha * ai
    mi = ln(h_, p["ln2_g"], p["ln2_b"])
    inter = _gelu(mi @ p["h4h_w"] + p["h4h_b"])
    return inter @ p["fhh_w"] + p["fhh_b"] + alpha * mi


# ----------------------------------- main ------------------------------------

if __name__ == "__main__":
    S, B, H, NH = 8, 2, 32, 4
    NUM_LAYERS = 28
    LAYER_ID = 1
    INNER = 4 * H

    key = jax.random.PRNGKey(0)
    ks = jax.random.split(key, 10)

    def winit(k_, shape, scale=0.05):
        return scale * jax.random.normal(k_, shape, dtype=jnp.float32)

    params = {
        "ln1_g": jnp.ones((H,), jnp.float32),
        "ln1_b": jnp.zeros((H,), jnp.float32),
        "ln2_g": jnp.ones((H,), jnp.float32),
        "ln2_b": jnp.zeros((H,), jnp.float32),
        # matmul weights stored in bf16 (MXU operands); biases stay f32.
        "qkv_w": winit(ks[0], (H, 3 * H)).astype(jnp.bfloat16),
        "qkv_b": winit(ks[1], (3 * H,)),
        "dense_w": winit(ks[2], (H, H)).astype(jnp.bfloat16),
        "dense_b": winit(ks[3], (H,)),
        "h4h_w": winit(ks[4], (H, INNER)).astype(jnp.bfloat16),
        "h4h_b": winit(ks[5], (INNER,)),
        "fhh_w": winit(ks[6], (INNER, H)).astype(jnp.bfloat16),
        "fhh_b": winit(ks[7], (H,)),
    }

    hidden_states = jax.random.normal(ks[8], (S, B, H), dtype=jnp.float32)

    # GLM-style 2D position ids [B, 2, S] and per-batch context lengths
    # (context_lengths encode the standard GLM prefix-causal attention mask).
    ctx_len = S - 1
    pos_row = jnp.concatenate(
        [jnp.arange(ctx_len, dtype=jnp.int32),
         jnp.full((S - ctx_len,), ctx_len - 1, jnp.int32)])
    blk_row = jnp.concatenate(
        [jnp.zeros((ctx_len,), jnp.int32),
         jnp.arange(1, S - ctx_len + 1, dtype=jnp.int32)])
    position_ids = jnp.broadcast_to(
        jnp.stack([pos_row, blk_row], axis=0), (B, 2, S))
    context_lengths = jnp.full((B,), ctx_len, dtype=jnp.int32)

    out = glm_block_forward(params, hidden_states, position_ids,
                            context_lengths, LAYER_ID, NH, NUM_LAYERS)
    out = jax.block_until_ready(out)
    assert out.shape == (S, B, H)
    assert bool(jnp.all(jnp.isfinite(out)))

    ref = glm_block_reference(params, hidden_states, position_ids,
                              context_lengths, LAYER_ID, NH, NUM_LAYERS)
    max_err = float(jnp.max(jnp.abs(out - ref)))
    assert bool(jnp.allclose(out, ref, rtol=5e-2, atol=1e-1)), max_err

    print("KERNEL_OK")
</pallas_src>

<mosaic_0001>
module attributes {stable_mosaic.version = 11 : i64} {
  func.func @_layernorm_kernel(%arg0: i32, %arg1: memref<16x32xf32, #tpu.memory_space<vmem>>, %arg2: memref<1x32xf32, #tpu.memory_space<vmem>>, %arg3: memref<1x32xf32, #tpu.memory_space<vmem>>, %arg4: memref<16x32xbf16, #tpu.memory_space<vmem>>) attributes {dimension_semantics = [#tpu.dimension_semantics<parallel>], iteration_bounds = array<i64: 1>, scalar_prefetch = 0 : i64, scratch_operands = 0 : i64, tpu.core_type = #tpu.core_type<tc>, window_params = [{transform_indices = @transform_0, window_bounds = array<i64: 16, 32>}, {pipeline_mode = #tpu.pipeline_mode<synchronous>, transform_indices = @transform_1, window_bounds = array<i64: 1, 32>}, {pipeline_mode = #tpu.pipeline_mode<synchronous>, transform_indices = @transform_2, window_bounds = array<i64: 1, 32>}, {transform_indices = @transform_3, window_bounds = array<i64: 16, 32>}]} {
    %c0 = arith.constant 0 : index
    %c0_0 = arith.constant 0 : index
    %0 = vector.load %arg1[%c0, %c0_0] : memref<16x32xf32, #tpu.memory_space<vmem>>, vector<16x32xf32>
    %cst = arith.constant dense<0.000000e+00> : vector<16xf32>
    %1 = vector.multi_reduction <add>, %0, %cst [1] : vector<16x32xf32> to vector<16xf32>
    %2 = vector.shape_cast %1 : vector<16xf32> to vector<16x1xf32>
    %cst_1 = arith.constant 3.200000e+01 : f32
    %3 = vector.broadcast %cst_1 : f32 to vector<16x1xf32>
    %4 = arith.divf %2, %3 : vector<16x1xf32>
    %5 = vector.broadcast %4 : vector<16x1xf32> to vector<16x32xf32>
    %6 = arith.subf %0, %5 : vector<16x32xf32>
    %7 = arith.mulf %6, %6 : vector<16x32xf32>
    %cst_2 = arith.constant dense<0.000000e+00> : vector<16xf32>
    %8 = vector.multi_reduction <add>, %7, %cst_2 [1] : vector<16x32xf32> to vector<16xf32>
    %9 = vector.shape_cast %8 : vector<16xf32> to vector<16x1xf32>
    %cst_3 = arith.constant 3.200000e+01 : f32
    %10 = vector.broadcast %cst_3 : f32 to vector<16x1xf32>
    %11 = arith.divf %9, %10 : vector<16x1xf32>
    %12 = vector.broadcast %4 : vector<16x1xf32> to vector<16x32xf32>
    %13 = arith.subf %0, %12 : vector<16x32xf32>
    %cst_4 = arith.constant 9.99999974E-6 : f32
    %14 = vector.broadcast %cst_4 : f32 to vector<16x1xf32>
    %15 = arith.addf %11, %14 : vector<16x1xf32>
    %16 = math.rsqrt %15 : vector<16x1xf32>
    %17 = vector.broadcast %16 : vector<16x1xf32> to vector<16x32xf32>
    %18 = arith.mulf %13, %17 : vector<16x32xf32>
    %c0_5 = arith.constant 0 : index
    %c0_6 = arith.constant 0 : index
    %19 = vector.load %arg2[%c0_5, %c0_6] : memref<1x32xf32, #tpu.memory_space<vmem>>, vector<1x32xf32>
    %20 = vector.broadcast %19 : vector<1x32xf32> to vector<16x32xf32>
    %21 = arith.mulf %18, %20 : vector<16x32xf32>
    %c0_7 = arith.constant 0 : index
    %c0_8 = arith.constant 0 : index
    %22 = vector.load %arg3[%c0_7, %c0_8] : memref<1x32xf32, #tpu.memory_space<vmem>>, vector<1x32xf32>
    %23 = vector.broadcast %22 : vector<1x32xf32> to vector<16x32xf32>
    %24 = arith.addf %21, %23 : vector<16x32xf32>
    %25 = arith.truncf %24 : vector<16x32xf32> to vector<16x32xbf16>
    %c0_9 = arith.constant 0 : index
    %c0_10 = arith.constant 0 : index
    %26 = vector.load %arg4[%c0_9, %c0_10] : memref<16x32xbf16, #tpu.memory_space<vmem>>, vector<16x32xbf16>
    tpu.vector_store %arg4[%c0_9, %c0_10], %25 {strides = array<i32>} : memref<16x32xbf16, #tpu.memory_space<vmem>>, vector<16x32xbf16>,
    return
  }
  func.func @transform_0(%arg0: i32) -> (i32, i32) {
    %c0_i32 = arith.constant 0 : i32
    %c0_i32_0 = arith.constant 0 : i32
    return %arg0, %c0_i32 : i32, i32
  }
  func.func @transform_1(%arg0: i32) -> (i32, i32) {
    %c0_i32 = arith.constant 0 : i32
    %c0_i32_0 = arith.constant 0 : i32
    %c0_i32_1 = arith.constant 0 : i32
    return %c0_i32, %c0_i32_0 : i32, i32
  }
  func.func @transform_2(%arg0: i32) -> (i32, i32) {
    %c0_i32 = arith.constant 0 : i32
    %c0_i32_0 = arith.constant 0 : i32
    %c0_i32_1 = arith.constant 0 : i32
    return %c0_i32, %c0_i32_0 : i32, i32
  }
  func.func @transform_3(%arg0: i32) -> (i32, i32) {
    %c0_i32 = arith.constant 0 : i32
    %c0_i32_0 = arith.constant 0 : i32
    return %arg0, %c0_i32 : i32, i32
  }
}

</mosaic_0001>

<bundles_post_ra>
// kernel: tpu_custom_call.1
= control target key start
LH: loop header
LB: loop body
LE: loop exit
PB: predicated region body
PF: predicated region fallthrough
CT: control target
= control target key end

     0   :  { %8 = vsyncpa [#allocation3], 0  ;;  %s274_s0 = inlined_call_operand.hbm [shape: f32[16,32], index: 0, kind: input, shape index: {}]   ;;  %s275_s1 = inlined_call_operand.hbm [shape: f32[1,32], index: 1, kind: input, shape index: {}]   ;;  %s276_s2 = inlined_call_operand.vmem [shape: f32[1,32], index: 2, kind: input, shape index: {}]   ;;  %s277_s3 = inlined_call_operand.hbm [shape: bf16[16,32], index: 3, kind: output, shape index: {}]  }
   0x1   :  { %9 = vsyncpa [#allocation6], 0 }
   0x2   :  { %10 = vsyncpa [#allocation4], 0  ;;  %s15_s14 = sshll.u32 %s274_s0, 4  ;;  %s230_s15 = smov [#allocation2]   ;;  %s16_s14 = int_to_ptr.hbm [resolvable:$true] %s15_s14 }
   0x3   :  { %s17_s16 = sshll.u32 %s230_s15, 4  ;;  %s29_s19 = sshll.u32 %s275_s1, 4  ;;  %s18_s16 = int_to_ptr.vmem [resolvable:$true] %s17_s16  ;;  %s30_s19 = int_to_ptr.hbm [resolvable:$true] %s29_s19 }
   0x4   :  { %s231_s20 = smov 128   ;;  %s232_s21 = smov 8  }
   0x5   :  { %23 = dma.hbm_to_vmem [thread:$0]  %s16_s14, 256, %s18_s16, [#allocation3], %s231_s20, %s231_s20, %s232_s21  }
   0x6   :  { %s233_s22 = smov [#allocation5]  }
   0x7   :  { %s31_s23 = sshll.u32 %s233_s22, 4  ;;  %s32_s23 = int_to_ptr.vmem [resolvable:$true] %s31_s23 }
   0x8   :  { %34 = dma.hbm_to_vmem [thread:$0]  %s30_s19, 16, %s32_s23, [#allocation6]  }
   0x9   :  { %224 = dma.done.wait [#allocation3], 256  }
   0xa   :  { %225 = vsyncadd [#allocation3], 4294967040 }
   0xb   :  { %226 = dma.done.wait [#allocation6], 16  }
   0xc   :  { %227 = vsyncadd [#allocation6], 4294967280  ;;  %vm47_vm0 = vcmask 261120   ;;  %v45_v0 = vld [vmem:[#allocation2] sm:$0xff]  ;;  %v46_v2 = vld [vmem:[#allocation2 + $0x8] sm:$0xff]  ;;  %v234_v4 = vmov 32.0  }
   0xd   :  { %v48_v1 = vsel %vm47_vm0, %v45_v0, 0.0  ;;  %v51_v3 = vsel %vm47_vm0, %v46_v2, 0.0  ;;  %146 = vrcp.f32 %v234_v4  ;;  %v144_v35 = vld [vmem:[#allocation5] ss:$0 sm:$0xff]  ;;  %v145_v38 = vld [vmem:[%s276_s2] ss:$0 sm:$0xff] }
   0xe   :  { %49 = vadd.xlane.f32.xlu0 %v48_v1  ;;  %vm113_vm7 = vcmask 257024   ;;  %s235_s24 = smov [#allocation7]   ;;  %s122_s2 = sshll.u32 %s277_s3, 4  ;;  %s123_s2 = int_to_ptr.hbm [resolvable:$true] %s122_s2 }
   0xf   :  { %s120_s25 = sshll.u32 %s235_s24, 4  ;;  %s236_s28 = smov 64   ;;  %s121_s25 = int_to_ptr.vmem [resolvable:$true] %s120_s25 }
  0x10   :  { %s237_s29 = smov 4  }
  0x13   :  { %v147_v5 = vpop.eup %146 }
  0x14   :  { %v55_v6 = vmul.f32 32.0, %v147_v5  ;;  %vm59_vm1 = vweird.f32 %v147_v5 }
  0x16   :  { %52 = vadd.xlane.f32.xlu0 %v51_v3  ;;  %v56_v7 = vsub.f32 1.0, %v55_v6 }
  0x18   :  { %v57_v8 = vmul.f32 %v147_v5, %v56_v7 }
  0x1a   :  { %v58_v9 = vadd.f32 %v147_v5, %v57_v8 }
  0x1c   :  { %v60_v10 = vsel %vm59_vm1, %v147_v5, %v58_v9 }
  0x81   :  { %v50_v11 = vpop.xlane.xlu0 %49 }
  0x82   :  { %v61_v12 = vmul.f32 %v60_v10, %v50_v11 }
  0x84   :  { %v63_v13 = vsub.f32 %v45_v0, %v61_v12 }
  0x86   :  { %v65_v14 = vmul.f32 %v63_v13, %v63_v13 }
  0x88   :  { %v67_v15 = vsel %vm47_vm0, %v65_v14, 0.0 }
  0x89   :  { %68 = vadd.xlane.f32.xlu1 %v67_v15  ;;  %v53_v16 = vpop.xlane.xlu0 %52 }
  0x8a   :  { %v62_v17 = vmul.f32 %v60_v10, %v53_v16 }
  0x8c   :  { %v64_v18 = vsub.f32 %v46_v2, %v62_v17 }
  0x8e   :  { %v66_v19 = vmul.f32 %v64_v18, %v64_v18 }
  0x90   :  { %v70_v20 = vsel %vm47_vm0, %v66_v19, 0.0 }
  0x91   :  { %71 = vadd.xlane.f32.xlu1 %v70_v20 }
  0xfc   :  { %v69_v21 = vpop.xlane.xlu1 %68 }
  0xfd   :  { %v73_v22 = vmul.f32 %v69_v21, %v60_v10 }
  0xff   :  { %v75_v23 = vadd.f32 1e-05, %v73_v22 }
 0x101   :  { %148 = vrsqrt.f32 %v75_v23  ;;  %vm83_vm3 = vweird.f32 %v75_v23 }
 0x104   :  { %v72_v24 = vpop.xlane.xlu1 %71 }
 0x105   :  { %v74_v25 = vmul.f32 %v72_v24, %v60_v10 }
 0x107   :  { %v149_v26 = vpop.eup %148  ;;  %v76_v27 = vadd.f32 1e-05, %v74_v25 }
 0x108   :  { %v78_v28 = vmul.f32 %v149_v26, %v75_v23  ;;  %vm84_vm2 = vweird.f32 %v149_v26 }
 0x109   :  { %150 = vrsqrt.f32 %v76_v27  ;;  %vm85_vm4 = vmor %vm83_vm3, %vm84_vm2  ;;  %vm93_vm6 = vweird.f32 %v76_v27 }
 0x10a   :  { %v79_v29 = vmul.f32 %v149_v26, %v78_v28 }
 0x10c   :  { %v80_v30 = vmul.f32 0.5, %v79_v29 }
 0x10e   :  { %v81_v31 = vsub.f32 1.5, %v80_v30 }
 0x10f   :  { %v151_v32 = vpop.eup %150 }
 0x110   :  { %v82_v33 = vmul.f32 %v149_v26, %v81_v31  ;;  %v88_v34 = vmul.f32 %v151_v32, %v76_v27  ;;  %vm94_vm5 = vweird.f32 %v151_v32 }
 0x111   :  { %vm95_vm8 = vmor %vm93_vm6, %vm94_vm5 }
 0x112   :  { %v86_v36 = vsel %vm85_vm4, %v149_v26, %v82_v33  ;;  %v89_v37 = vmul.f32 %v151_v32, %v88_v34 }
 0x113   :  { %v97_v39 = vmul.f32 %v86_v36, %v63_v13 }
 0x114   :  { %v90_v40 = vmul.f32 0.5, %v89_v37 }
 0x115   :  { %v103_v41 = vmul.f32 %v144_v35, %v97_v39 }
 0x116   :  { %v91_v42 = vsub.f32 1.5, %v90_v40 }
 0x117   :  { %v109_v43 = vadd.f32 %v145_v38, %v103_v41 }
 0x118   :  { %v92_v44 = vmul.f32 %v151_v32, %v91_v42 }
 0x119   :  { %v111_v45 = vpack.c.bf16 %v109_v43, %v109_v43 }
 0x11a   :  { %v96_v46 = vsel %vm95_vm8, %v151_v32, %v92_v44 }
 0x11b   :  { %v98_v47 = vmul.f32 %v96_v46, %v64_v18  ;;  %114 = vst.msk [vmem:[#allocation7] sm:$0xf] %vm113_vm7, %v111_v45 }
 0x11d   :  { %v104_v48 = vmul.f32 %v144_v35, %v98_v47 }
 0x11f   :  { %v110_v49 = vadd.f32 %v145_v38, %v104_v48 }
 0x121   :  { %v112_v50 = vpack.c.bf16 %v110_v49, %v110_v49 }
 0x123   :  { %115 = vst.msk [vmem:[#allocation7 + $0x4] sm:$0xf] %vm113_vm7, %v112_v50 }
 0x124   :  { %128 = dma.vmem_to_hbm [thread:$0]  %s121_s25, 128, %s123_s2, [#allocation4], %s236_s28, %s236_s28, %s237_s29  }
 0x125   :  { %228 = dma.done.wait [#allocation4], 128  }
 0x126   :  { %229 = vsyncadd [#allocation4], 4294967168 }
 0x127   :  { %133 = vsyncpa [#allocation3], 1 }
 0x128   :  { %134 = vsyncpa [#allocation6], 1 }
 0x129   :  { %135 = vsyncpa [#allocation4], 1 }

</bundles_post_ra>
